<compile_context>
chip_gen: v7x
topology: tpu7x:2x2x1
jax: 0.10.0
libtpu: 0.0.40
codegen_flags: <defaults>
</compile_context>

<pallas_src>
import functools

import jax
import jax.numpy as jnp
from jax.experimental import pallas as pl
from jax.experimental.pallas import tpu as pltpu


# ----------------------------------------------------------------------------
# Kernels
# ----------------------------------------------------------------------------
def _ffn_kernel_resident(x_ref, w1_ref, b1_ref, w2_ref, b2_ref, o_ref):
    # x_ref: (tm, E) bf16   w1_ref: (E, H) bf16   b1_ref: (1, H) f32
    # w2_ref: (H, E) bf16   b2_ref: (1, E) f32    o_ref: (tm, E) f32
    h = jnp.dot(x_ref[...], w1_ref[...], preferred_element_type=jnp.float32)
    h = (h + b1_ref[...]).astype(w2_ref.dtype)   # bias add in f32, then bf16
    h = jnp.maximum(h, 0.0)                      # ReLU in bf16 (2 elems/lane)
    o_ref[...] = (jnp.dot(h, w2_ref[...], preferred_element_type=jnp.float32)
                  + b2_ref[...]).astype(o_ref.dtype)
    # TODO(synk): nn.Dropout is identity in eval mode; training-mode dropout
    # (pltpu.prng_random_bits mask) intentionally not applied here.


def _ffn_kernel_tiled(x_ref, w1_ref, b1_ref, w2_ref, b2_ref, o_ref):
    # Hidden-dim reduction axis k; o_ref (f32) block index is constant across
    # k, so it stays resident in VMEM and acts as the accumulator directly.
    k = pl.program_id(1)

    @pl.when(k == 0)
    def _():
        o_ref[...] = jnp.zeros_like(o_ref)

    h = jnp.dot(x_ref[...], w1_ref[...], preferred_element_type=jnp.float32)
    h = (h + b1_ref[...]).astype(w2_ref.dtype)   # bias add in f32, then bf16
    h = jnp.maximum(h, 0.0)                      # ReLU in bf16
    o_ref[...] += jnp.dot(h, w2_ref[...], preferred_element_type=jnp.float32)

    @pl.when(k == pl.num_programs(1) - 1)
    def _():
        # TODO(synk): nn.Dropout is identity in eval mode (no mask applied).
        o_ref[...] += b2_ref[...]


# ----------------------------------------------------------------------------
# Trace-time helpers (plain Python)
# ----------------------------------------------------------------------------
def _round_up(a, b):
    return (a + b - 1) // b * b


def _largest_divisor(n, target):
    """Largest d <= target with n % d == 0 (always >= 1)."""
    target = max(1, min(int(target), int(n)))
    for d in range(target, 0, -1):
        if n % d == 0:
            return d
    return n


def _vmem_budget_bytes():
    """Generation-aware usable-VMEM budget (physical minus compiler headroom)."""
    try:
        cap = int(pltpu.get_tpu_info().vmem_capacity_bytes)
    except Exception:
        cap = 64 << 20                      # conservative: assume v7x-sized VMEM
    return int(min(max(cap - (16 << 20), 32 << 20), 100 << 20))


def _default_row_tile():
    """Row tile large enough to be MXU-bound on each generation when weights
    must be streamed (arithmetic intensity per weight byte ~ tm)."""
    try:
        kind = jax.devices()[0].device_kind.lower()
    except Exception:
        return 512
    if "v7" in kind:
        return 512
    if "v6" in kind:
        return 640
    if "v5" in kind and ("lite" in kind or "v5e" in kind):
        return 256
    return 512


def _num_tensorcores():
    try:
        dev = jax.devices()[0]
        for attr in ("num_cores", "core_count"):
            v = getattr(dev, attr, None)
            if v:
                return int(v)
    except Exception:
        pass
    return 1


# ----------------------------------------------------------------------------
# Wrapper
# ----------------------------------------------------------------------------
@functools.partial(jax.jit, static_argnames=("tm", "th", "force_tiled"))
def feed_forward_network(x, w1, b1, w2, b2, *, tm=None, th=None,
                         force_tiled=False):
    """x: (B, T, E). w1: (E, 4E), b1: (1, 4E), w2: (4E, E), b2: (1, E).

    Returns (B, T, E) in x.dtype. Matmuls run in bf16 with f32 accumulation.
    """
    B, T, E = x.shape
    H = w1.shape[1]                         # 4 * E
    N = B * T
    budget = _vmem_budget_bytes()

    # ---- row tile selection (16-aligned for bf16 sublane packing) ----------
    if tm is None:
        tm = _default_row_tile()
    rows16 = _round_up(N, 16)
    tm = max(16, min(_round_up(int(tm), 16), rows16))

    # ---- mode selection: weights fully VMEM-resident when they fit ---------
    def resident_bytes(tm_):
        return (2 * (E * H + H * E) * 2          # W1 + W2 (bf16, double-buffered)
                + 2 * tm_ * E * 2                # x tile (bf16)
                + 2 * tm_ * E * 4                # out tile (f32)
                + 2 * (H + E) * 4)               # biases (f32)

    resident = (not force_tiled) and (resident_bytes(tm) <= budget)

    if resident and _num_tensorcores() >= 2 and rows16 >= 32 and rows16 // tm < 2:
        # Give the second TensorCore a row tile (free: weights are resident).
        tm = max(16, min(tm, _round_up((rows16 + 1) // 2, 16)))

    # ---- hidden tile selection for the tiled path ---------------------------
    def tiled_bytes(tm_, th_):
        return (2 * (tm_ * E * 2 + E * th_ * 2 + th_ * 4 + th_ * E * 2 + E * 4)
                + 2 * tm_ * E * 4)               # resident f32 output tile

    if not resident:
        if th is None:
            th = 1024 if budget >= (80 << 20) else 512
        th = _largest_divisor(H, min(int(th), H))
        while tiled_bytes(tm, th) > budget and th > 128:
            th = _largest_divisor(H, th // 2)
        while tiled_bytes(tm, th) > budget and tm > 64:
            tm = max(64, _round_up(tm // 2, 16))

    # ---- pad rows to a multiple of tm ---------------------------------------
    Np = _round_up(N, tm)
    x2d = x.reshape(N, E)
    if Np != N:
        x2d = jnp.pad(x2d, ((0, Np - N), (0, 0)))
    n_row_tiles = Np // tm

    # bf16 operands halve HBM/VMEM traffic and run at native MXU rate;
    # accumulation stays f32 inside the kernel.
    x_bf = x2d.astype(jnp.bfloat16)
    w1_bf = w1.astype(jnp.bfloat16)
    w2_bf = w2.astype(jnp.bfloat16)
    b1_f32 = b1.astype(jnp.float32)
    b2_f32 = b2.astype(jnp.float32)

    w_passes = 1 if resident else n_row_tiles
    cost = pl.CostEstimate(
        flops=4 * Np * E * H,                    # two matmuls, 2*N*E*H each
        transcendentals=0,
        bytes_accessed=int(x_bf.size * 2 + Np * E * 4
                           + (w1_bf.size + w2_bf.size) * 2 * w_passes
                           + (b1_f32.size + b2_f32.size) * 4 * w_passes),
    )
    vmem_limit = int(budget)

    if resident:
        grid_spec = pltpu.PrefetchScalarGridSpec(
            num_scalar_prefetch=0,
            grid=(n_row_tiles,),
            in_specs=[
                pl.BlockSpec((tm, E), lambda i: (i, 0)),   # x row tile
                pl.BlockSpec((E, H), lambda i: (0, 0)),    # W1 (resident)
                pl.BlockSpec((1, H), lambda i: (0, 0)),    # b1 (resident)
                pl.BlockSpec((H, E), lambda i: (0, 0)),    # W2 (resident)
                pl.BlockSpec((1, E), lambda i: (0, 0)),    # b2 (resident)
            ],
            out_specs=pl.BlockSpec((tm, E), lambda i: (i, 0)),
        )
        kernel = _ffn_kernel_resident
        dim_sem = ("parallel",)
    else:
        grid_spec = pltpu.PrefetchScalarGridSpec(
            num_scalar_prefetch=0,
            grid=(n_row_tiles, H // th),
            in_specs=[
                pl.BlockSpec((tm, E), lambda i, k: (i, 0)),   # x row tile
                pl.BlockSpec((E, th), lambda i, k: (0, k)),   # W1 hidden tile
                pl.BlockSpec((1, th), lambda i, k: (0, k)),   # b1 hidden tile
                pl.BlockSpec((th, E), lambda i, k: (k, 0)),   # W2 hidden tile
                pl.BlockSpec((1, E), lambda i, k: (0, 0)),    # b2 (resident)
            ],
            out_specs=pl.BlockSpec((tm, E), lambda i, k: (i, 0)),
        )
        kernel = _ffn_kernel_tiled
        dim_sem = ("parallel", "arbitrary")

    out2d = pl.pallas_call(
        kernel,
        out_shape=jax.ShapeDtypeStruct((Np, E), jnp.float32),
        grid_spec=grid_spec,
        compiler_params=pltpu.CompilerParams(
            dimension_semantics=dim_sem,
            vmem_limit_bytes=vmem_limit,
        ),
        cost_estimate=cost,
    )(x_bf, w1_bf, b1_f32, w2_bf, b2_f32)

    return out2d[:N].reshape(B, T, E).astype(x.dtype)


# ----------------------------------------------------------------------------
# Parameter init (matches nn.Linear shapes) and demo
# ----------------------------------------------------------------------------
def init_params(key, embedding_dimension_count):
    E = embedding_dimension_count
    H = 4 * E
    k1, k2, k3, k4 = jax.random.split(key, 4)
    bound1 = 1.0 / (E ** 0.5)
    bound2 = 1.0 / (H ** 0.5)
    w1 = jax.random.uniform(k1, (E, H), jnp.float32, -bound1, bound1)
    b1 = jax.random.uniform(k2, (1, H), jnp.float32, -bound1, bound1)
    w2 = jax.random.uniform(k3, (H, E), jnp.float32, -bound2, bound2)
    b2 = jax.random.uniform(k4, (1, E), jnp.float32, -bound2, bound2)
    return w1, b1, w2, b2


if __name__ == "__main__":
    key = jax.random.PRNGKey(0)
    kx, kp = jax.random.split(key)

    B, T, E = 2, 8, 32          # batch=2, seq=8, embedding_dimension_count=32
    x = jax.random.normal(kx, (B, T, E), dtype=jnp.float32)
    w1, b1, w2, b2 = init_params(kp, E)

    # plain-JAX f32 reference (bf16 matmuls in the kernel -> looser tolerance)
    ref = (jnp.maximum(x.reshape(-1, E) @ w1 + b1, 0.0) @ w2 + b2)
    ref = ref.reshape(B, T, E)

    # Default path (weights resident in VMEM for this small E).
    out = jax.block_until_ready(feed_forward_network(x, w1, b1, w2, b2))
    assert out.shape == (B, T, E)
    assert jnp.allclose(out, ref, atol=5e-2, rtol=5e-2)

    # Also exercise the hidden-dim-tiled path used for large E.
    out_tiled = jax.block_until_ready(
        feed_forward_network(x, w1, b1, w2, b2, force_tiled=True))
    assert out_tiled.shape == (B, T, E)
    assert jnp.allclose(out_tiled, ref, atol=5e-2, rtol=5e-2)

    print("KERNEL_OK")
</pallas_src>

<mosaic_0001>
module attributes {stable_mosaic.version = 11 : i64} {
  func.func @_ffn_kernel_resident(%arg0: i32, %arg1: memref<16x32xbf16, #tpu.memory_space<vmem>>, %arg2: memref<32x128xbf16, #tpu.memory_space<vmem>>, %arg3: memref<1x128xf32, #tpu.memory_space<vmem>>, %arg4: memref<128x32xbf16, #tpu.memory_space<vmem>>, %arg5: memref<1x32xf32, #tpu.memory_space<vmem>>, %arg6: memref<16x32xf32, #tpu.memory_space<vmem>>) attributes {dimension_semantics = [#tpu.dimension_semantics<parallel>], iteration_bounds = array<i64: 1>, scalar_prefetch = 0 : i64, scratch_operands = 0 : i64, tpu.core_type = #tpu.core_type<tc>, window_params = [{transform_indices = @transform_0, window_bounds = array<i64: 16, 32>}, {pipeline_mode = #tpu.pipeline_mode<synchronous>, transform_indices = @transform_1, window_bounds = array<i64: 32, 128>}, {pipeline_mode = #tpu.pipeline_mode<synchronous>, transform_indices = @transform_2, window_bounds = array<i64: 1, 128>}, {pipeline_mode = #tpu.pipeline_mode<synchronous>, transform_indices = @transform_3, window_bounds = array<i64: 128, 32>}, {pipeline_mode = #tpu.pipeline_mode<synchronous>, transform_indices = @transform_4, window_bounds = array<i64: 1, 32>}, {transform_indices = @transform_5, window_bounds = array<i64: 16, 32>}]} {
    %c0 = arith.constant 0 : index
    %c0_0 = arith.constant 0 : index
    %0 = vector.load %arg1[%c0, %c0_0] : memref<16x32xbf16, #tpu.memory_space<vmem>>, vector<16x32xbf16>
    %c0_1 = arith.constant 0 : index
    %c0_2 = arith.constant 0 : index
    %1 = vector.load %arg2[%c0_1, %c0_2] : memref<32x128xbf16, #tpu.memory_space<vmem>>, vector<32x128xbf16>
    %cst = arith.constant dense<0.000000e+00> : vector<16x128xf32>
    %2 = tpu.matmul %0, %1, %cst {dimension_numbers = #tpu.dot_dimension_numbers<[1], [0], [0], [1], [0, 0, 1, 1], [], []>} : vector<16x32xbf16>, vector<32x128xbf16>, vector<16x128xf32> -> vector<16x128xf32>
    %c0_3 = arith.constant 0 : index
    %c0_4 = arith.constant 0 : index
    %3 = vector.load %arg3[%c0_3, %c0_4] : memref<1x128xf32, #tpu.memory_space<vmem>>, vector<1x128xf32>
    %4 = vector.broadcast %3 : vector<1x128xf32> to vector<16x128xf32>
    %5 = arith.addf %2, %4 : vector<16x128xf32>
    %6 = arith.truncf %5 : vector<16x128xf32> to vector<16x128xbf16>
    %cst_5 = arith.constant 0.000000e+00 : bf16
    %7 = vector.broadcast %cst_5 : bf16 to vector<16x128xbf16>
    %8 = arith.maximumf %6, %7 : vector<16x128xbf16>
    %c0_6 = arith.constant 0 : index
    %c0_7 = arith.constant 0 : index
    %9 = vector.load %arg4[%c0_6, %c0_7] : memref<128x32xbf16, #tpu.memory_space<vmem>>, vector<128x32xbf16>
    %cst_8 = arith.constant dense<0.000000e+00> : vector<16x32xf32>
    %10 = tpu.matmul %8, %9, %cst_8 {dimension_numbers = #tpu.dot_dimension_numbers<[1], [0], [0], [1], [0, 0, 1, 1], [], []>} : vector<16x128xbf16>, vector<128x32xbf16>, vector<16x32xf32> -> vector<16x32xf32>
    %c0_9 = arith.constant 0 : index
    %c0_10 = arith.constant 0 : index
    %11 = vector.load %arg5[%c0_9, %c0_10] : memref<1x32xf32, #tpu.memory_space<vmem>>, vector<1x32xf32>
    %12 = vector.broadcast %11 : vector<1x32xf32> to vector<16x32xf32>
    %13 = arith.addf %10, %12 : vector<16x32xf32>
    %c0_11 = arith.constant 0 : index
    %c0_12 = arith.constant 0 : index
    %14 = vector.load %arg6[%c0_11, %c0_12] : memref<16x32xf32, #tpu.memory_space<vmem>>, vector<16x32xf32>
    tpu.vector_store %arg6[%c0_11, %c0_12], %13 {strides = array<i32>} : memref<16x32xf32, #tpu.memory_space<vmem>>, vector<16x32xf32>,
    return
  }
  func.func @transform_0(%arg0: i32) -> (i32, i32) {
    %c0_i32 = arith.constant 0 : i32
    %c0_i32_0 = arith.constant 0 : i32
    return %arg0, %c0_i32 : i32, i32
  }
  func.func @transform_1(%arg0: i32) -> (i32, i32) {
    %c0_i32 = arith.constant 0 : i32
    %c0_i32_0 = arith.constant 0 : i32
    %c0_i32_1 = arith.constant 0 : i32
    return %c0_i32, %c0_i32_0 : i32, i32
  }
  func.func @transform_2(%arg0: i32) -> (i32, i32) {
    %c0_i32 = arith.constant 0 : i32
    %c0_i32_0 = arith.constant 0 : i32
    %c0_i32_1 = arith.constant 0 : i32
    return %c0_i32, %c0_i32_0 : i32, i32
  }
  func.func @transform_3(%arg0: i32) -> (i32, i32) {
    %c0_i32 = arith.constant 0 : i32
    %c0_i32_0 = arith.constant 0 : i32
    %c0_i32_1 = arith.constant 0 : i32
    return %c0_i32, %c0_i32_0 : i32, i32
  }
  func.func @transform_4(%arg0: i32) -> (i32, i32) {
    %c0_i32 = arith.constant 0 : i32
    %c0_i32_0 = arith.constant 0 : i32
    %c0_i32_1 = arith.constant 0 : i32
    return %c0_i32, %c0_i32_0 : i32, i32
  }
  func.func @transform_5(%arg0: i32) -> (i32, i32) {
    %c0_i32 = arith.constant 0 : i32
    %c0_i32_0 = arith.constant 0 : i32
    return %arg0, %c0_i32 : i32, i32
  }
}

</mosaic_0001>

<bundles_post_ra>
// kernel: feed_forward_network.1
= control target key start
LH: loop header
LB: loop body
LE: loop exit
PB: predicated region body
PF: predicated region fallthrough
CT: control target
= control target key end

     0   :  { %v324_v1 = vmov 0.0   ;;  %vm325_vm0 = vmmov 0   ;;  %vm52_vm1 = vcmask 261120   ;;  %s414_s0 = inlined_call_operand.vmem [shape: bf16[16,32], index: 0, kind: input, shape index: {}]   ;;  %s415_s1 = inlined_call_operand.vmem [shape: bf16[32,128], index: 1, kind: input, shape index: {}]   ;;  %s416_s2 = inlined_call_operand.vmem [shape: f32[1,128], index: 2, kind: input, shape index: {}]   ;;  %s417_s3 = inlined_call_operand.vmem [shape: bf16[128,32], index: 3, kind: input, shape index: {}]   ;;  %s418_s4 = inlined_call_operand.vmem [shape: f32[1,32], index: 4, kind: input, shape index: {}]   ;;  %s419_s5 = inlined_call_operand.hbm [shape: f32[16,32], index: 5, kind: output, shape index: {}]  }
   0x1   :  { %v289_v0 = vld [vmem:[%s415_s1] sm:$0xff]   ;;  %255 = vmatprep.subr.bf16.mxu0 %v324_v1  ;;  %263 = vmatprep.subr.bf16.mxu1 %v324_v1  ;;  %v290_v2 = vld [vmem:[%s415_s1 + $0x8] sm:$0xff]   ;;  %v294_v6 = vld [vmem:[%s417_s3 + $0x10] sm:$0xff]  }
   0x2   :  { %256 = vmatpush3.bf16.msra.mxu0 %v289_v0  ;;  %259 = vmatprep.mubr.msk.bf16.mxu0 %vm325_vm0, %v324_v1  ;;  %v292_v3 = vld [vmem:[%s417_s3] sm:$0xff]   ;;  %v293_v5 = vld [vmem:[%s417_s3 + $0x8] sm:$0xff]  }
   0x3   :  { %257 = vmatprep.subr.bf16.mxu0 %v324_v1  ;;  %279 = vmatprep.mubr.msk.bf16.mxu1 %vm325_vm0, %v324_v1  ;;  %v291_v4 = vld [vmem:[%s414_s0] sm:$0xff]  }
   0x4   :  { %264 = vmatpush3.bf16.msra.mxu1 %v292_v3 }
   0x5   :  { %265 = vmatprep.subr.bf16.mxu1 %v324_v1 }
   0x6   :  { %258 = vmatpush3.bf16.msra.mxu0 %v290_v2 }
   0x8   :  { %266 = vmatpush3.bf16.msra.mxu1 %v293_v5 }
   0x9   :  { %260 = vmatmul.mubr.msk.bf16.vlgmr.msra.gmra.mrb[0].mxu0 %vm52_vm1, %v291_v4  ;;  %267 = vmatprep.subr.bf16.mxu1 %v324_v1 }
   0xa   :  { %10 = vsyncpa [#allocation3], 0  ;;  %v295_v7 = vld [vmem:[%s417_s3 + $0x18] sm:$0xff]   ;;  %v296_v8 = vld [vmem:[%s417_s3 + $0x20] sm:$0xff]   ;;  %v326_v20 = vmov 0  }
   0xb   :  { %v297_v9 = vld [vmem:[%s417_s3 + $0x28] sm:$0xff]   ;;  %v298_v10 = vld [vmem:[%s417_s3 + $0x30] sm:$0xff]   ;;  %v299_v11 = vld [vmem:[%s417_s3 + $0x38] sm:$0xff]   ;;  %s327_s3 = smov [#allocation2]  }
   0xc   :  { %268 = vmatpush3.bf16.msra.mxu1 %v294_v6  ;;  %v229_v12 = vld [vmem:[%s416_s2] ss:$0 sm:$0xff]  ;;  %s218_s17 = sshll.u32 %s327_s3, 4  ;;  %s219_s17 = int_to_ptr.vmem [resolvable:$true] %s218_s17 }
   0xd   :  { %269 = vmatprep.subr.bf16.mxu1 %v324_v1  ;;  %v234_v22 = vld [vmem:[%s418_s4] ss:$0 sm:$0xff]  ;;  %s300_s2 = scalar_lea.vmem %s219_s17, 256  ;;  %p305_p1 = scmp.lt.s32.totalorder %s219_s17, %s219_s17 }
   0xe   :  { %p301_p0 = scmp.ne.s32.totalorder %s219_s17, %s300_s2  ;;  %p306_p2 = scmp.lt.s32.totalorder %s300_s2, %s300_s2 }
  0x10   :  { %270 = vmatpush3.bf16.msra.mxu1 %v295_v7  ;;  %p307_p3 = por %p306_p2, %p305_p1 }
  0x11   :  { %271 = vmatprep.subr.bf16.mxu1 %v324_v1 }
  0x12   :  { %p308_p4 = pnand %p307_p3, %p301_p0 }
  0x14   :  { %272 = vmatpush3.bf16.msra.mxu1 %v296_v8 }
  0x15   :  { %273 = vmatprep.subr.bf16.mxu1 %v324_v1 }
  0x18   :  { %274 = vmatpush3.bf16.msra.mxu1 %v297_v9 }
  0x19   :  { %275 = vmatprep.subr.bf16.mxu1 %v324_v1 }
  0x1c   :  { %276 = vmatpush3.bf16.msra.mxu1 %v298_v10 }
  0x1d   :  { %277 = vmatprep.subr.bf16.mxu1 %v324_v1 }
  0x20   :  { %278 = vmatpush3.bf16.msra.mxu1 %v299_v11 }
  0xdc   :  { %v90_v13 = vpop.f32.mrb[0].mxu0 }
  0xdd   :  { %v261_v14 = vpop.f32.mrb[1].mxu0  ;;  %v91_v16 = vadd.f32 %v229_v12, %v90_v13 }
  0xde   :  { %v93_v15 = vpop.f32.mrb[2].mxu0 }
  0xdf   :  { %v94_v17 = vadd.f32 %v229_v12, %v93_v15  ;;  %v262_v18 = vpop.f32.mrb[3].mxu0 }
  0xe1   :  { %v97_v19 = vpack.c.bf16 %v94_v17, %v91_v16 }
  0xe3   :  { %v98_v21 = vmax.bf16 %v326_v20, %v97_v19 }
  0xe5   :  { %280 = vmatmul.mubr.bf16.vlgmr.msra.gmra.mrb[0].mxu1 %v98_v21 }
 0x1b8   :  { %v204_v23 = vpop.f32.mrb[0].mxu1 }
 0x1b9   :  { %v205_v24 = vadd.f32 %v234_v22, %v204_v23  ;;  %v281_v25 = vpop.f32.mrb[1].mxu1 }
 0x1ba   :  { %v207_v26 = vpop.f32.mrb[2].mxu1 }
 0x1bb   :  { %211 = vst.msk [vmem:[#allocation2] sm:$0xff] %vm52_vm1, %v205_v24  ;;  %v208_v27 = vadd.f32 %v234_v22, %v207_v26  ;;  %v282_v28 = vpop.f32.mrb[3].mxu1 }
 0x1bd   :  { %212 = vst.msk [vmem:[#allocation2 + $0x8] sm:$0xff] %vm52_vm1, %v208_v27 }
 0x1be   :  { %311 = shalt.err (!%p308_p4)
}
 0x1bf   :  { %s312_s19 = scalar_lea.hbm %s419_s5, 256 }
 0x1c0   :  { %p313_p5 = scmp.ne.s32.totalorder %s419_s5, %s312_s19  ;;  %p316_p6 = scmp.lt.u32.totalorder %s312_s19, %s419_s5 }
 0x1c2   :  { %p318_p7 = pnand %p316_p6, %p313_p5 }
 0x1c4   :  { %321 = shalt.err (!%p318_p7)
}
 0x1c5   :  { %s328_s24 = smov 128   ;;  %s329_s25 = smov 8  }
 0x1c6   :  { %224 = dma.vmem_to_hbm [thread:$0]  %s219_s17, 256, %s419_s5, [#allocation3], %s328_s24, %s328_s24, %s329_s25  }
 0x1c7   :  { %322 = dma.done.wait [#allocation3], 256  }
 0x1c8   :  { %323 = vsyncadd [#allocation3], 4294967040 }
 0x1c9   :  { %228 = vsyncpa [#allocation3], 1 }

</bundles_post_ra>
